<compile_context>
chip_gen: v6e
topology: v6e:2x2x1
jax: 0.10.0
libtpu: 0.0.40
codegen_flags: <defaults>
</compile_context>

<pallas_src>
import math
import jax
import jax.numpy as jnp
from jax.experimental import pallas as pl
from jax.experimental.pallas import tpu as pltpu


def _sse_kernel(x_ref, w_ref, b_ref, o_ref):
    # x_ref: (1, Cin, T)   one sample, one HW tile (channels on sublanes, HW on lanes)
    # w_ref: (Cin, 1)      1x1 conv weight (Cin -> 1 channel)
    # b_ref: (1, 1)        conv bias
    # o_ref: (1, Cin, T)   gated output, same layout as input
    x = x_ref[0]                                                     # (Cin, T)
    # 1x1 conv to a single channel: per-channel scale then small sublane sum.
    s = jnp.sum(x * w_ref[...], axis=0, keepdims=True) + b_ref[...]  # (1, T)
    gate = 1.0 / (1.0 + jnp.exp(-s))                                 # sigmoid (EUP)
    o_ref[0] = x * gate                                              # broadcast over Cin


def sse_pallas(x_nchw, weight, bias, *, max_hw_tile=8192):
    """SSE forward.

    x_nchw: (N, Cin, H, W) float32
    weight: (1, Cin)  -- 1x1 Conv2d(Cin, 1) weight (spatial 1x1 dims squeezed)
    bias  : (1,)
    returns (N, Cin, H, W)
    """
    N, Cin, H, W = x_nchw.shape
    HW = H * W

    # Free views only -- the kernel works on (N, Cin, HW); no data movement here.
    x = x_nchw.reshape(N, Cin, HW).astype(jnp.float32)
    w = weight.astype(jnp.float32).reshape(Cin, 1)
    b = bias.astype(jnp.float32).reshape(1, 1)

    # HW tile: whole image if it fits, else 128-aligned chunks so stores stay
    # unmasked (lane-dense).  8192 lanes * Cin f32, double-buffered in+out, is
    # far inside v7x's 64 MiB VMEM while amortizing the ~0.35us grid-step cost.
    if HW <= max_hw_tile:
        tile_hw = HW                      # full-extent block: always legal
    else:
        tile_hw = max(128, (max_hw_tile // 128) * 128)
    grid = (N, pl.cdiv(HW, tile_hw))

    out = pl.pallas_call(
        _sse_kernel,
        out_shape=jax.ShapeDtypeStruct((N, Cin, HW), jnp.float32),
        grid_spec=pltpu.PrefetchScalarGridSpec(
            num_scalar_prefetch=0,
            grid=grid,
            in_specs=[
                pl.BlockSpec((1, Cin, tile_hw), lambda n, t: (n, 0, t)),
                pl.BlockSpec((Cin, 1), lambda n, t: (0, 0)),
                pl.BlockSpec((1, 1), lambda n, t: (0, 0)),
            ],
            out_specs=pl.BlockSpec((1, Cin, tile_hw), lambda n, t: (n, 0, t)),
        ),
        compiler_params=pltpu.CompilerParams(
            dimension_semantics=("parallel", "parallel")),
    )(x, w, b)

    return out.reshape(N, Cin, H, W)      # free view back to NCHW


def sse_reference(x_nchw, weight, bias):
    # y = sigmoid(conv1x1(x)); out = x * y
    s = jnp.einsum("nchw,oc->nohw", x_nchw, weight) + bias[None, :, None, None]
    gate = 1.0 / (1.0 + jnp.exp(-s))
    return x_nchw * gate


if __name__ == "__main__":
    # SSE(in_ch=4) on a (2, 4, 16, 16) input.
    in_channels = 4
    N, H, W = 2, 16, 16

    key = jax.random.PRNGKey(0)
    kx, kw, kb = jax.random.split(key, 3)

    x = jax.random.normal(kx, (N, in_channels, H, W), dtype=jnp.float32)

    # Conv2d(in_channels, 1, kernel_size=1) parameters (PyTorch-style uniform init).
    fan_in = in_channels
    limit = 1.0 / math.sqrt(fan_in)
    weight = jax.random.uniform(kw, (1, in_channels), minval=-limit, maxval=limit,
                                dtype=jnp.float32)
    bias = jax.random.uniform(kb, (1,), minval=-limit, maxval=limit,
                              dtype=jnp.float32)

    out = sse_pallas(x, weight, bias)
    out = jax.block_until_ready(out)

    ref = sse_reference(x, weight, bias)
    assert out.shape == (N, in_channels, H, W)
    assert jnp.allclose(out, ref, atol=1e-5, rtol=1e-5), "mismatch vs reference"

    print("KERNEL_OK")
</pallas_src>

<mosaic_0001>
module attributes {stable_mosaic.version = 11 : i64} {
  func.func @_sse_kernel(%arg0: i32, %arg1: i32, %arg2: memref<1x4x256xf32, #tpu.memory_space<vmem>>, %arg3: memref<4x1xf32, #tpu.memory_space<vmem>>, %arg4: memref<1x1xf32, #tpu.memory_space<vmem>>, %arg5: memref<1x4x256xf32, #tpu.memory_space<vmem>>) attributes {dimension_semantics = [#tpu.dimension_semantics<parallel>, #tpu.dimension_semantics<parallel>], iteration_bounds = array<i64: 2, 1>, scalar_prefetch = 0 : i64, scratch_operands = 0 : i64, tpu.core_type = #tpu.core_type<tc>, window_params = [{transform_indices = @transform_0, window_bounds = array<i64: 1, 4, 256>}, {pipeline_mode = #tpu.pipeline_mode<synchronous>, transform_indices = @transform_1, window_bounds = array<i64: 4, 1>}, {pipeline_mode = #tpu.pipeline_mode<synchronous>, transform_indices = @transform_2, window_bounds = array<i64: 1, 1>}, {transform_indices = @transform_3, window_bounds = array<i64: 1, 4, 256>}]} {
    %c0 = arith.constant 0 : index
    %c0_0 = arith.constant 0 : index
    %c0_1 = arith.constant 0 : index
    %0 = vector.load %arg2[%c0, %c0_0, %c0_1] : memref<1x4x256xf32, #tpu.memory_space<vmem>>, vector<1x4x256xf32>
    %1 = vector.shape_cast %0 : vector<1x4x256xf32> to vector<4x256xf32>
    %c0_2 = arith.constant 0 : index
    %c0_3 = arith.constant 0 : index
    %2 = vector.load %arg3[%c0_2, %c0_3] : memref<4x1xf32, #tpu.memory_space<vmem>>, vector<4x1xf32>
    %3 = vector.broadcast %2 : vector<4x1xf32> to vector<4x256xf32>
    %4 = arith.mulf %1, %3 : vector<4x256xf32>
    %cst = arith.constant dense<0.000000e+00> : vector<256xf32>
    %5 = vector.multi_reduction <add>, %4, %cst [0] : vector<4x256xf32> to vector<256xf32>
    %6 = vector.shape_cast %5 : vector<256xf32> to vector<1x256xf32>
    %c0_4 = arith.constant 0 : index
    %c0_5 = arith.constant 0 : index
    %7 = vector.load %arg4[%c0_4, %c0_5] : memref<1x1xf32, #tpu.memory_space<vmem>>, vector<1x1xf32>
    %8 = vector.broadcast %7 : vector<1x1xf32> to vector<1x256xf32>
    %9 = arith.addf %6, %8 : vector<1x256xf32>
    %cst_6 = arith.constant 0.000000e+00 : f32
    %10 = vector.broadcast %cst_6 : f32 to vector<1x256xf32>
    %11 = arith.subf %10, %9 : vector<1x256xf32>
    %12 = math.exp %11 : vector<1x256xf32>
    %cst_7 = arith.constant 1.000000e+00 : f32
    %13 = vector.broadcast %cst_7 : f32 to vector<1x256xf32>
    %14 = arith.addf %13, %12 : vector<1x256xf32>
    %cst_8 = arith.constant 1.000000e+00 : f32
    %15 = vector.broadcast %cst_8 : f32 to vector<1x256xf32>
    %16 = arith.divf %15, %14 : vector<1x256xf32>
    %17 = vector.broadcast %16 : vector<1x256xf32> to vector<4x256xf32>
    %18 = arith.mulf %1, %17 : vector<4x256xf32>
    %c0_9 = arith.constant 0 : index
    %c0_10 = arith.constant 0 : index
    %c0_11 = arith.constant 0 : index
    %19 = vector.load %arg5[%c0_9, %c0_10, %c0_11] : memref<1x4x256xf32, #tpu.memory_space<vmem>>, vector<1x4x256xf32>
    %20 = vector.shape_cast %19 : vector<1x4x256xf32> to vector<4x256xf32>
    %21 = vector.shape_cast %18 : vector<4x256xf32> to vector<1x4x256xf32>
    tpu.vector_store %arg5[%c0_9, %c0_10, %c0_11], %21 {strides = array<i32>} : memref<1x4x256xf32, #tpu.memory_space<vmem>>, vector<1x4x256xf32>,
    return
  }
  func.func @transform_0(%arg0: i32, %arg1: i32) -> (i32, i32, i32) {
    %c0_i32 = arith.constant 0 : i32
    %c0_i32_0 = arith.constant 0 : i32
    return %arg0, %c0_i32, %arg1 : i32, i32, i32
  }
  func.func @transform_1(%arg0: i32, %arg1: i32) -> (i32, i32) {
    %c0_i32 = arith.constant 0 : i32
    %c0_i32_0 = arith.constant 0 : i32
    %c0_i32_1 = arith.constant 0 : i32
    return %c0_i32, %c0_i32_0 : i32, i32
  }
  func.func @transform_2(%arg0: i32, %arg1: i32) -> (i32, i32) {
    %c0_i32 = arith.constant 0 : i32
    %c0_i32_0 = arith.constant 0 : i32
    %c0_i32_1 = arith.constant 0 : i32
    return %c0_i32, %c0_i32_0 : i32, i32
  }
  func.func @transform_3(%arg0: i32, %arg1: i32) -> (i32, i32, i32) {
    %c0_i32 = arith.constant 0 : i32
    %c0_i32_0 = arith.constant 0 : i32
    return %arg0, %c0_i32, %arg1 : i32, i32, i32
  }
}

</mosaic_0001>

<bundles_post_ra>
// kernel: tpu_custom_call.1
= control target key start
LH: loop header
LB: loop body
LE: loop exit
PB: predicated region body
PF: predicated region fallthrough
CT: control target
= control target key end

     0   :  { %s741_s0 = inlined_call_operand.hbm [shape: f32[2,4,256], index: 0, kind: input, shape index: {}]   ;;  %s742_s1 = inlined_call_operand.vmem [shape: f32[4,1], index: 1, kind: input, shape index: {}]   ;;  %s743_s2 = inlined_call_operand.<no memory space> [shape: f32[1,1], index: 2, kind: input, shape index: {}]   ;;  %s744_s3 = inlined_call_operand.hbm [shape: f32[2,4,256], index: 3, kind: output, shape index: {}]  }
   0x1   :  { %v8_v0 = vstv %s743_s2 }
   0x2   :  { %9 = vst [vmem:[#allocation2] sm:$0x1] %v8_v0 }
   0x3   :  { %10 = vsyncpa [#allocation4], 0 }
   0x4   :  { %12 = vsyncpa [#allocation4 + $0x1], 0 }
   0x5   :  { %13 = vsyncpa [#allocation5], 0 }
   0x6   :  { %15 = vsyncpa [#allocation5 + $0x1], 0  ;;  %s600_s14 = smov 0   ;;  %s602_s15 = smov 0  }
   0x7   :  { %s604_s16 = smov 0   ;;  %s606_s17 = smov 0  }
   0x8   :  { %s608_s18 = smov 0   ;;  %s610_s19 = smov 0  }
   0x9 LB: > { %s373_s2 = sadd.s32 4294967295, %s571_s19   ;;  %s374_s20 = sadd.s32 4294967294, %s571_s19   ;;  %s571_s19 = sphi %s610_s19, %s21_s19   ;;  %s567_s18 = sphi %s608_s18, %s756_s18   ;;  %s563_s17 = sphi %s606_s17, %s755_s17   ;;  %s559_s16 = sphi %s604_s16, %s754_s16   ;;  %s555_s15 = sphi %s602_s15, %s753_s15   ;;  %s551_s14 = sphi %s600_s14, %s752_s14  }
   0xa   : > { %s33_s21 = sadd.s32 1, %s567_s18  ;;  %s42_s22 = sadd.s32 1, %s559_s16 }
   0xb   : > { %p35_p0 = scmp.ge.s32.totalorder %s33_s21, 2  ;;  %p49_p1 = scmp.ne.s32.totalorder %s559_s16, %s555_s15 }
   0xc   : > { %p50_p2 = scmp.eq.s32.totalorder %s571_s19, 0  ;;  %p55_p3 = scmp.ne.s32.totalorder %s555_s15, %s551_s14 }
   0xd   : > { %s758_s21 = smov (%p35_p0, %s33_s21), 0  ;;  %p56_p5 = scmp.eq.s32.totalorder %s373_s2, 0 }
   0xe   : > { %p641_p4 = por %p50_p2, %p49_p1  ;;  %s37_s24 = ssub.s32 %s567_s18, %s758_s21 }
   0xf   : > { %p123_p6 = scmp.eq.s32.totalorder %s373_s2, 1  ;;  %p40_p7 = scmp.eq.s32.totalorder %s37_s24, 0 }
  0x10   : > { %p647_p8 = por %p56_p5, %p55_p3  ;;  %p129_p10 = scmp.eq.s32.totalorder %s374_s20, 1 }
  0x11   : > { %p651_p9 = por %p123_p6, %p49_p1  ;;  %p402_p13 = scmp.lt.s32.totalorder %s571_s19, 2 }
  0x12   : > { %s656_s27 = scalar_select %p40_p7, %s559_s16, %s42_s22  }
  0x13   : > { %p658_p11 = por %p129_p10, %p55_p3  ;;  %s155_s29 = sand.u32 1, %s559_s16  }
  0x14   : > { %s377_s30 = sshll.u32 %s155_s29, 3  ;;  %s388_s4 = sshll.u32 %s567_s18, 7 }
  0x15   : > { %s748_s28 = scalar_select %p658_p11, 1, 0 }
  0x16   : > { %s167_s7 = scalar_lea.hbm %s741_s0, %s388_s4  ;;  %s159_s8 = scalar_lea.vmem [#allocation3], %s377_s30 }
  0x17   : > { %s169_s9 = sshll.u32 %s159_s8, 4  ;;  %p671_p0 = pnand %p402_p13, %p641_p4  ;;  %s170_s9 = int_to_ptr.vmem [resolvable:$true] %s169_s9 }
  0x18   : > { %p380_p1 = scmp.ge.s32.totalorder %s571_s19, 1  ;;  %p174_p2 = scmp.lt.s32.totalorder %s571_s19, 3 }
  0x19   : > { %s156_s11 = scalar_lea.sflag [#allocation4], %s155_s29  ;;  %p465_p3 = pneg %p671_p0 }
  0x1a   : > { %s476_s12 = scalar_lea.vmem %s170_s9, 128  ;;  %s573_s13 = smov [#allocation3]  }
  0x1b   : > { %p477_p5 = scmp.ne.s32.totalorder %s170_s9, %s476_s12  ;;  %s481_s2 = sshll.u32 %s573_s13, 4  ;;  %s482_s2 = int_to_ptr.vmem [resolvable:$false] %s481_s2 }
  0x1c   : > { %s483_s20 = scalar_lea.vmem %s482_s2, 256  ;;  %p484_p10 = scmp.lt.s32.totalorder %s170_s9, %s482_s2 }
  0x1d   : > { %p479_p6 = pnand %p477_p5, %p465_p3  ;;  %p485_p12 = scmp.lt.s32.totalorder %s483_s20, %s476_s12 }
  0x1f   : > { %p480_p7 = pneg %p479_p6  ;;  %p486_p4 = por %p485_p12, %p484_p10 }
  0x21   : > { %p487_p13 = pnand %p486_p4, %p480_p7 }
  0x23   : > { %490 = shalt.err (!%p487_p13)
}
  0x24   : > { %397 = dma.hbm_to_vmem [thread:$0]  (!%p671_p0), %s167_s7, 128, %s170_s9, %s156_s11  }
  0x25   : > { %p175_p11 = pnand %p380_p1, %p174_p2 }
  0x26   : > { %s686_s22 = sand.u32 (!%p175_p11), 1, %s555_s15  }
  0x27   : > { %178 = sbr.rel (%p175_p11) target bundleno = 243 (0xf3), region = 32  ;;  %s381_s23 = sshll.u32 (!%p175_p11), %s686_s22, 3 }
  0x28   : > { %s181_s24 = scalar_lea.sflag (!%p175_p11), [#allocation4], %s686_s22  ;;  %s184_s29 = scalar_lea.vmem (!%p175_p11), [#allocation3], %s381_s23 }
  0x2c   : > { %542 = dma.done.wait (%p647_p8), %s181_s24, 128  }
  0x2d   : > { %544 = vsyncadd (%p647_p8), %s181_s24, 4294967168  ;;  %v574_v1 = vmov 0   ;;  %v210_v2 = vld [vmem:[%s742_s1] sm:$0xf]  ;;  %v575_v4 = vmov 839922192   ;;  %v218_v6 = vlaneseq }
  0x2e   : > { %454 = vset.pattern.permute.xlu0 %v574_v1  ;;  %v242_v3 = vld [vmem:[#allocation2] sm:$0x1]  ;;  %v216_v5 = vunpack.c.l.s4 %v575_v4  ;;  %v209_v11 = vld [vmem:[%s184_s29] sm:$0xff]  ;;  %vm227_vm0 = vcmask 1043456   ;;  %s389_s25 = sshll.u32 %s563_s17, 7  ;;  %s206_s5 = scalar_lea.vmem [#allocation6], %s381_s23 }
  0x2f   : > { %213 = vperm.xlu0 %454, %v210_v2   ;;  %v219_v8 = vshrl.u32 %v218_v6, 7  ;;  %s289_s6 = sshll.u32 %s206_s5, 4  ;;  %s287_s9 = scalar_lea.hbm %s744_s3, %s389_s25  ;;  %s290_s6 = int_to_ptr.vmem [resolvable:$true] %s289_s6 }
  0x30   : > { %v217_v7 = vunpack.c.0.s8 %v216_v5  ;;  %s273_s10 = scalar_lea.sflag [#allocation5], %s686_s22  ;;  %s491_s11 = scalar_lea.vmem %s290_s6, 128 }
  0x31   : > { %v250_v22 = vsub.s32 0, %v219_v8  ;;  %p492_p8 = scmp.ne.s32.totalorder %s290_s6, %s491_s11  ;;  %s576_s12 = smov [#allocation6]  }
  0x32   : > { %v220_v9 = vsub.s32 %v217_v7, %v219_v8  ;;  %s495_s13 = sshll.u32 %s576_s12, 4  ;;  %s496_s13 = int_to_ptr.vmem [resolvable:$false] %s495_s13 }
  0x33   : > { %245 = vperm.xlu0 %454, %v242_v3   ;;  %p493_p11 = pnand %p492_p8, %p651_p9  ;;  %s497_s17 = scalar_lea.vmem %s496_s13, 256 }
  0x34   : > { %p498_p0 = scmp.lt.s32.totalorder %s290_s6, %s496_s13  ;;  %p499_p1 = scmp.lt.s32.totalorder %s497_s17, %s491_s11 }
  0x35   : > { %p494_p12 = pneg %p493_p11 }
  0x36   : > { %p500_p2 = por %p499_p1, %p498_p0 }
  0x38   : > { %p501_p3 = pnand %p500_p2, %p494_p12 }
  0xaa   : > { %v214_v10 = vpop.permute.xlu0 %213 }
  0xab   : > { %v221_v12 = vrot.slane %v214_v10, %v220_v9 }
  0xad   : > { %v223_v13 = vmul.f32 %v221_v12, %v209_v11 }
  0xae   : > { %v246_v25 = vpop.permute.xlu0 %245 }
  0xaf   : > { %v225_v14 = vcombine.high %v223_v13, %v223_v13  ;;  %v228_v15 = vsel %vm227_vm0, %v223_v13, 0.0  ;;  %v251_v30 = vrot.slane %v246_v25, %v250_v22 }
  0xb0   : > { %v229_v16 = vrot.slane %v228_v15, 4 }
  0xb1   : > { %v235_v17 = vsel %vm227_vm0, %v225_v14, 0.0 }
  0xb2   : > { %v230_v18 = vadd.f32 %v229_v16, %v228_v15  ;;  %v236_v19 = vrot.slane %v235_v17, 4 }
  0xb4   : > { %v231_v20 = vrot.slane %v230_v18, 2  ;;  %v237_v21 = vadd.f32 %v236_v19, %v235_v17 }
  0xb6   : > { %v232_v23 = vadd.f32 %v231_v20, %v230_v18  ;;  %v238_v24 = vrot.slane %v237_v21, 2 }
  0xb8   : > { %v233_v26 = vrot.slane %v232_v23, 1  ;;  %v239_v27 = vadd.f32 %v238_v24, %v237_v21 }
  0xba   : > { %v234_v28 = vadd.f32 %v233_v26, %v232_v23  ;;  %v240_v29 = vrot.slane %v239_v27, 1 }
  0xbc   : > { %v241_v31 = vadd.f32 %v240_v29, %v239_v27  ;;  %v252_v32 = vadd.f32 %v251_v30, %v234_v28 }
  0xbe   : > { %v253_v33 = vadd.f32 %v251_v30, %v241_v31  ;;  %v254_v34 = vsub.f32 0.0, %v252_v32 }
  0xc0   : > { %v255_v35 = vsub.f32 0.0, %v253_v33  ;;  %v256_v36 = vmul.f32 1.442695, %v254_v34 }
  0xc2   : > { %455 = vpow2.f32 %v256_v36  ;;  %v258_v37 = vmul.f32 1.442695, %v255_v35 }
  0xc4   : > { %457 = vpow2.f32 %v258_v37 }
  0xcf   : > { %v456_v38 = vpop.eup %455 }
  0xd0   : > { %v260_v39 = vadd.f32 1.0, %v456_v38 }
  0xd1   : > { %v458_v40 = vpop.eup %457 }
  0xd2   : > { %v261_v41 = vadd.f32 1.0, %v458_v40  ;;  %459 = vrcp.f32 %v260_v39 }
  0xd4   : > { %461 = vrcp.f32 %v261_v41 }
  0xdf   : > { %v460_v42 = vpop.eup %459 }
  0xe1   : > { %v462_v43 = vpop.eup %461 }
  0xe2   : > { %v268_v44 = vcombine.low %v460_v42, %v462_v43 }
  0xe4   : > { %v270_v45 = vmul.f32 %v268_v44, %v209_v11 }
  0xe6   : > { %271 = vst [vmem:[%s206_s5] sm:$0xff] %v270_v45 }
  0xe7   : > { %504 = shalt.err (!%p501_p3)
}
  0xe8   : > { %s505_s2 = scalar_lea.hbm %s287_s9, 128  ;;  %s509_s23 = scalar_lea.hbm %s744_s3, 256 }
  0xe9   : > { %p506_p5 = scmp.ne.s32.totalorder %s287_s9, %s505_s2  ;;  %p510_p10 = scmp.lt.s32.totalorder %s287_s9, %s744_s3 }
  0xea   : > { %p511_p4 = scmp.lt.s32.totalorder %s509_s23, %s505_s2 }
  0xeb   : > { %p507_p6 = pnand %p506_p5, %p651_p9 }
  0xec   : > { %p512_p13 = por %p511_p4, %p510_p10 }
  0xed   : > { %p508_p7 = pneg %p507_p6 }
  0xef   : > { %p513_p8 = pnand %p512_p13, %p508_p7 }
  0xf1   : > { %516 = shalt.err (!%p513_p8)
}
  0xf2   : > { %392 = dma.vmem_to_hbm [thread:$0]  (%p651_p9), %s290_s6, 128, %s287_s9, %s273_s10  }
  0xf3 PF: > { %s301_s30 = sand.u32 1, %s551_s14   ;;  %p750_p11 = scmp.ne.s32.totalorder %s748_s28, 0 }
  0xf4   : > { %p751_p12 = scmp.ge.s32.totalorder %s571_s19, 2  ;;  %s302_s4 = scalar_lea.sflag [#allocation5], %s301_s30 }
  0xf6   : > { %p399_p0 = pnand %p751_p12, %p750_p11 }
  0xf8   : > { %p400_p1 = pneg %p399_p0 }
  0xfa   : > { %546 = dma.done.wait (%p400_p1), %s302_s4, 128  }
  0xfb   : > { %548 = vsyncadd (%p400_p1), %s302_s4, 4294967168  ;;  %s21_s19 = sadd.s32 1, %s571_s19   ;;  %s752_s14 = smov %s555_s15 }
  0xfc   : > { %p18_p2 = scmp.ge.s32.totalorder %s21_s19, 4   ;;  %s753_s15 = smov %s559_s16 }
  0xfd   : > { %s754_s16 = smov %s656_s27  ;;  %s755_s17 = smov %s567_s18 }
  0xfe   : > { %s756_s18 = smov %s758_s21  ;;  %20 = sbr.rel (!%p18_p2) target bundleno = 9 (0x9), region = 77 }
 0x103   :  { %307 = vsyncpa [#allocation4], 1 }
 0x104   :  { %309 = vsyncpa [#allocation4 + $0x1], 1 }
 0x105   :  { %310 = vsyncpa [#allocation5], 1 }
 0x106   :  { %312 = vsyncpa [#allocation5 + $0x1], 1 }

</bundles_post_ra>
